<compile_context>
chip_gen: v7x
topology: tpu7x:2x2x1
jax: 0.10.0
libtpu: 0.0.40
codegen_flags: <defaults>
</compile_context>

<pallas_src>
import functools
import math

import jax
import jax.numpy as jnp
from jax.experimental import pallas as pl
from jax.experimental.pallas import tpu as pltpu

# ----------------------------- model config ---------------------------------
IN_CHANNELS = 2       # viewport position dimension (Conv1d kernel_size/stride)
CONV_CHANNELS = 8     # ViewportFeatureEncoder out_channels
HIST_WINDOW = 8
FUT_WINDOW = 3
D_MODEL = 32
N_LAYER = 2
N_HEAD = 4
HEAD_DIM = D_MODEL // N_HEAD
N_POSITIONS = 64
BATCH = 2
T_MAX = 16            # padded sequence length (>= HIST+1+FUT, multiple of 8)
LN_EPS = 1e-5
NEG_SLOPE = 0.01      # nn.LeakyReLU default slope

_VMEM = pl.BlockSpec(memory_space=pltpu.MemorySpace.VMEM)


# --------------------------- in-kernel helpers -------------------------------
def _layernorm(x, g, b):
    mu = jnp.mean(x, axis=-1, keepdims=True)
    var = jnp.mean((x - mu) * (x - mu), axis=-1, keepdims=True)
    return (x - mu) * jax.lax.rsqrt(var + LN_EPS) * g + b


def _leaky_relu(x):
    return jnp.where(x >= 0.0, x, NEG_SLOPE * x)


def _gelu_new(x):                       # GPT-2 tanh-approx GELU
    c = math.sqrt(2.0 / math.pi)
    return 0.5 * x * (1.0 + jnp.tanh(c * (x + 0.044715 * x * x * x)))


def _sigmoid(x):
    return 1.0 / (1.0 + jnp.exp(-x))


def _matmul_cols(x, w, b):
    """x @ w + b with a tiny (K=2/8) contraction done as VPU broadcast MACs."""
    acc = b
    for c in range(w.shape[0]):
        acc = acc + x[:, c:c + 1] * w[c:c + 1, :]
    return acc


# ------------------ spec module: ViewportFeatureEncoder ----------------------
def _encoder_kernel(x_ref, w_ref, b_ref, o_ref):
    # Conv1d(1, C_out, kernel_size=C_in, stride=C_in) on one timestep window is
    # a dense layer over the C_in features; followed by LeakyReLU.
    o_ref[...] = _leaky_relu(_matmul_cols(x_ref[...], w_ref[...], b_ref[...]))


def viewport_feature_encoder(x, conv_w, conv_b):
    """ViewportFeatureEncoder.forward: (B, T, C_in) -> (B, T, C_out)."""
    B, T, Cin = x.shape
    Cout = conv_w.shape[1]
    y = pl.pallas_call(
        _encoder_kernel,
        out_shape=jax.ShapeDtypeStruct((B * T, Cout), jnp.float32),
        in_specs=[_VMEM, _VMEM, _VMEM],
        out_specs=_VMEM,
    )(x.reshape(B * T, Cin).astype(jnp.float32), conv_w, conv_b)
    return y.reshape(B, T, Cout)


# ---------------- fused ViewportPretrainedLM rollout kernel ------------------
def _plm_rollout_kernel(
        tgt_ref, wpe_ref,
        conv_w_ref, conv_b_ref, lin_w_ref, lin_b_ref, eln_g_ref, eln_b_ref,
        ln1_g_ref, ln1_b_ref, attn_w_ref, attn_b_ref, proj_w_ref, proj_b_ref,
        ln2_g_ref, ln2_b_ref, fc_w_ref, fc_b_ref, fcp_w_ref, fcp_b_ref,
        lnf_g_ref, lnf_b_ref, head_w_ref, head_b_ref,
        o_ref, attn_buf, *, batch):
    # o_ref doubles as the autoregressive sequence buffer, (B*T_MAX, C_in).
    o_ref[...] = tgt_ref[...]

    wpe = wpe_ref[...]
    conv_w = conv_w_ref[...]; conv_b = conv_b_ref[...]
    lin_w = lin_w_ref[...];   lin_b = lin_b_ref[...]
    eln_g = eln_g_ref[...];   eln_b = eln_b_ref[...]
    lnf_g = lnf_g_ref[...];   lnf_b = lnf_b_ref[...]
    head_w = head_w_ref[...]; head_b = head_b_ref[...]
    layers = [dict(
        ln1_g=ln1_g_ref[l], ln1_b=ln1_b_ref[l],
        attn_w=attn_w_ref[l], attn_b=attn_b_ref[l],
        proj_w=proj_w_ref[l], proj_b=proj_b_ref[l],
        ln2_g=ln2_g_ref[l], ln2_b=ln2_b_ref[l],
        fc_w=fc_w_ref[l], fc_b=fc_b_ref[l],
        fcp_w=fcp_w_ref[l], fcp_b=fcp_b_ref[l]) for l in range(N_LAYER)]

    row_t = jax.lax.broadcasted_iota(jnp.int32, (T_MAX, T_MAX), 0)
    col_t = jax.lax.broadcasted_iota(jnp.int32, (T_MAX, T_MAX), 1)
    row_idx = jax.lax.broadcasted_iota(jnp.int32, (batch * T_MAX, 1), 0)
    scale = 1.0 / math.sqrt(HEAD_DIM)

    for s in range(FUT_WINDOW):                      # fully unrolled rollout
        length = HIST_WINDOW + 1 + s                 # valid tokens this step
        tgt = o_ref[...]                             # (B*T_MAX, C_in)

        # --- ViewportFeatureEncoder (conv-as-dense + LeakyReLU), then embed ---
        feat = _leaky_relu(_matmul_cols(tgt, conv_w, conv_b))          # (BT, 8)
        emb = jnp.dot(feat, lin_w, preferred_element_type=jnp.float32) + lin_b
        emb = _layernorm(emb, eln_g, eln_b)                            # (BT, D)
        h = emb + wpe                                                  # + wpe

        # --- GPT-2 backbone (causal + key-length mask, padded rows inert) ---
        mask = (col_t <= row_t) & (col_t < length)
        for lp in layers:
            xa = _layernorm(h, lp["ln1_g"], lp["ln1_b"])
            qkv = jnp.dot(xa, lp["attn_w"],
                          preferred_element_type=jnp.float32) + lp["attn_b"]
            for b in range(batch):
                r0 = b * T_MAX
                for hh in range(N_HEAD):
                    c0 = hh * HEAD_DIM
                    q = qkv[r0:r0 + T_MAX, c0:c0 + HEAD_DIM]
                    k = qkv[r0:r0 + T_MAX,
                            D_MODEL + c0:D_MODEL + c0 + HEAD_DIM]
                    v = qkv[r0:r0 + T_MAX,
                            2 * D_MODEL + c0:2 * D_MODEL + c0 + HEAD_DIM]
                    sc = jax.lax.dot_general(
                        q, k, (((1,), (1,)), ((), ())),
                        preferred_element_type=jnp.float32) * scale
                    sc = jnp.where(mask, sc, -1e9)
                    sc = sc - jnp.max(sc, axis=-1, keepdims=True)
                    p = jnp.exp(sc)
                    p = p * pl.reciprocal(
                        jnp.sum(p, axis=-1, keepdims=True), approx=True)
                    attn_buf[r0:r0 + T_MAX, c0:c0 + HEAD_DIM] = jnp.dot(
                        p, v, preferred_element_type=jnp.float32)
            h = h + jnp.dot(attn_buf[...], lp["proj_w"],
                            preferred_element_type=jnp.float32) + lp["proj_b"]
            xm = _layernorm(h, lp["ln2_g"], lp["ln2_b"])
            ff = _gelu_new(jnp.dot(xm, lp["fc_w"],
                                   preferred_element_type=jnp.float32)
                           + lp["fc_b"])
            h = h + jnp.dot(ff, lp["fcp_w"],
                            preferred_element_type=jnp.float32) + lp["fcp_b"]

        h = _layernorm(h, lnf_g, lnf_b)
        pred = _sigmoid(jnp.dot(h, head_w,
                                preferred_element_type=jnp.float32) + head_b)

        # --- append the prediction from the last valid token at row `length` ---
        new_tgt = tgt
        for b in range(batch):
            src = b * T_MAX + length - 1
            dst = b * T_MAX + length
            new_tgt = jnp.where(row_idx == dst, pred[src:src + 1, :], new_tgt)
        o_ref[...] = new_tgt


# ----------------------------- parameters ------------------------------------
def _normal(key, shape, scale=0.02):
    return scale * jax.random.normal(key, shape, dtype=jnp.float32)


def init_params(key):
    # TODO(synk): pretrained GPT-2 / LoRA checkpoint weights cannot be loaded
    # in-script; deterministic random init is used (LoRA delta is zero at init).
    ks = iter(jax.random.split(key, 32))
    return {
        # ViewportFeatureEncoder Conv1d(1, conv_ch, k=in_ch, stride=in_ch):
        # weight (out_ch, 1, in_ch) stored transposed as (in_ch, out_ch).
        "conv_w": _normal(next(ks), (IN_CHANNELS, CONV_CHANNELS)),
        "conv_b": _normal(next(ks), (1, CONV_CHANNELS)),
        "lin_w": _normal(next(ks), (CONV_CHANNELS, D_MODEL)),
        "lin_b": _normal(next(ks), (1, D_MODEL)),
        "eln_g": jnp.ones((1, D_MODEL), jnp.float32),
        "eln_b": jnp.zeros((1, D_MODEL), jnp.float32),
        "head_w": _normal(next(ks), (D_MODEL, IN_CHANNELS)),
        "head_b": _normal(next(ks), (1, IN_CHANNELS)),
        "wpe": _normal(next(ks), (N_POSITIONS, D_MODEL)),
        "lnf_g": jnp.ones((1, D_MODEL), jnp.float32),
        "lnf_b": jnp.zeros((1, D_MODEL), jnp.float32),
        # GPT-2 blocks, stacked along a leading layer axis.
        "ln1_g": jnp.ones((N_LAYER, 1, D_MODEL), jnp.float32),
        "ln1_b": jnp.zeros((N_LAYER, 1, D_MODEL), jnp.float32),
        "attn_w": _normal(next(ks), (N_LAYER, D_MODEL, 3 * D_MODEL)),
        "attn_b": _normal(next(ks), (N_LAYER, 1, 3 * D_MODEL)),
        "proj_w": _normal(next(ks), (N_LAYER, D_MODEL, D_MODEL)),
        "proj_b": _normal(next(ks), (N_LAYER, 1, D_MODEL)),
        "ln2_g": jnp.ones((N_LAYER, 1, D_MODEL), jnp.float32),
        "ln2_b": jnp.zeros((N_LAYER, 1, D_MODEL), jnp.float32),
        "fc_w": _normal(next(ks), (N_LAYER, D_MODEL, 4 * D_MODEL)),
        "fc_b": _normal(next(ks), (N_LAYER, 1, 4 * D_MODEL)),
        "fcp_w": _normal(next(ks), (N_LAYER, 4 * D_MODEL, D_MODEL)),
        "fcp_b": _normal(next(ks), (N_LAYER, 1, D_MODEL)),
    }


_PARAM_ORDER = ("conv_w", "conv_b", "lin_w", "lin_b", "eln_g", "eln_b",
                "ln1_g", "ln1_b", "attn_w", "attn_b", "proj_w", "proj_b",
                "ln2_g", "ln2_b", "fc_w", "fc_b", "fcp_w", "fcp_b",
                "lnf_g", "lnf_b", "head_w", "head_b")


# ----------------------------- forward pass ----------------------------------
@jax.jit
def viewport_plm_forward(params, history, current, future):
    """ViewportPretrainedLM.forward: the whole FUT_WINDOW autoregressive
    rollout runs in one Pallas kernel over a fixed, padded T_MAX sequence."""
    B = history.shape[0]
    seq = jnp.concatenate([history, current], axis=1).astype(jnp.float32)
    pad = jnp.zeros((B, T_MAX - seq.shape[1], IN_CHANNELS), jnp.float32)
    tgt0 = jnp.concatenate([seq, pad], axis=1).reshape(B * T_MAX, IN_CHANNELS)
    wpe_tiled = jnp.tile(params["wpe"][:T_MAX], (B, 1))        # (B*T_MAX, D)

    kernel = functools.partial(_plm_rollout_kernel, batch=B)
    n_in = 2 + len(_PARAM_ORDER)
    tgt_out = pl.pallas_call(
        kernel,
        out_shape=jax.ShapeDtypeStruct((B * T_MAX, IN_CHANNELS), jnp.float32),
        in_specs=[_VMEM] * n_in,
        out_specs=_VMEM,
        scratch_shapes=[pltpu.VMEM((B * T_MAX, D_MODEL), jnp.float32)],
    )(tgt0, wpe_tiled, *[params[k] for k in _PARAM_ORDER])

    pred = tgt_out.reshape(B, T_MAX, IN_CHANNELS)[
        :, HIST_WINDOW + 1:HIST_WINDOW + 1 + FUT_WINDOW]
    return pred, future


def loss_function(pred, gt, dimension=2):
    """mean_square_error with viewport periodicity, then mean."""
    err = jnp.abs(pred - gt)
    err = jnp.minimum(err, jnp.abs(pred + 1.0 - gt))
    err = jnp.minimum(err, jnp.abs(pred - 1.0 - gt))
    return jnp.mean(jnp.sum(err * err, axis=-1) / dimension)


# ----------------------------------- main ------------------------------------
if __name__ == "__main__":
    key = jax.random.PRNGKey(0)
    k_param, k_hist, k_cur, k_fut = jax.random.split(key, 4)
    params = init_params(k_param)

    history = jax.random.uniform(k_hist, (BATCH, HIST_WINDOW, IN_CHANNELS),
                                 dtype=jnp.float32)
    current = jax.random.uniform(k_cur, (BATCH, 1, IN_CHANNELS),
                                 dtype=jnp.float32)
    future = jax.random.uniform(k_fut, (BATCH, FUT_WINDOW, IN_CHANNELS),
                                dtype=jnp.float32)

    # 1) Spec module on its own: ViewportFeatureEncoder forward.
    enc = viewport_feature_encoder(history, params["conv_w"], params["conv_b"])
    enc = jax.block_until_ready(enc)
    assert enc.shape == (BATCH, HIST_WINDOW, CONV_CHANNELS)
    assert bool(jnp.all(jnp.isfinite(enc)))

    # 2) Full fused forward (encoder + GPT-2 blocks + head + rollout, 1 kernel).
    pred, fut = viewport_plm_forward(params, history, current, future)
    pred = jax.block_until_ready(pred)
    loss = jax.block_until_ready(loss_function(pred, fut))

    assert pred.shape == (BATCH, FUT_WINDOW, IN_CHANNELS)
    assert bool(jnp.all(jnp.isfinite(pred)))
    assert bool(jnp.all((pred >= 0.0) & (pred <= 1.0)))   # sigmoid head range
    assert bool(jnp.isfinite(loss))
    print("KERNEL_OK")
</pallas_src>

<mosaic_0001>
module attributes {stable_mosaic.version = 11 : i64} {
  func.func @_encoder_kernel(%arg0: memref<16x2xf32, #tpu.memory_space<vmem>>, %arg1: memref<2x8xf32, #tpu.memory_space<vmem>>, %arg2: memref<1x8xf32, #tpu.memory_space<vmem>>, %arg3: memref<16x8xf32, #tpu.memory_space<vmem>>) attributes {dimension_semantics = [], scalar_prefetch = 0 : i64, scratch_operands = 0 : i64, tpu.core_type = #tpu.core_type<tc>} {
    %c0 = arith.constant 0 : index
    %c0_0 = arith.constant 0 : index
    %0 = vector.load %arg0[%c0, %c0_0] : memref<16x2xf32, #tpu.memory_space<vmem>>, vector<16x2xf32>
    %c0_1 = arith.constant 0 : index
    %c0_2 = arith.constant 0 : index
    %1 = vector.load %arg1[%c0_1, %c0_2] : memref<2x8xf32, #tpu.memory_space<vmem>>, vector<2x8xf32>
    %c0_3 = arith.constant 0 : index
    %c0_4 = arith.constant 0 : index
    %2 = vector.load %arg2[%c0_3, %c0_4] : memref<1x8xf32, #tpu.memory_space<vmem>>, vector<1x8xf32>
    %3 = vector.extract_strided_slice %0 {offsets = [0, 0], sizes = [16, 1], strides = [1, 1]} : vector<16x2xf32> to vector<16x1xf32>
    %4 = vector.extract_strided_slice %1 {offsets = [0, 0], sizes = [1, 8], strides = [1, 1]} : vector<2x8xf32> to vector<1x8xf32>
    %5 = vector.broadcast %3 : vector<16x1xf32> to vector<16x8xf32>
    %6 = vector.broadcast %4 : vector<1x8xf32> to vector<16x8xf32>
    %7 = arith.mulf %5, %6 : vector<16x8xf32>
    %8 = vector.broadcast %2 : vector<1x8xf32> to vector<16x8xf32>
    %9 = arith.addf %8, %7 : vector<16x8xf32>
    %10 = vector.extract_strided_slice %0 {offsets = [0, 1], sizes = [16, 1], strides = [1, 1]} : vector<16x2xf32> to vector<16x1xf32>
    %11 = vector.extract_strided_slice %1 {offsets = [1, 0], sizes = [1, 8], strides = [1, 1]} : vector<2x8xf32> to vector<1x8xf32>
    %12 = vector.broadcast %10 : vector<16x1xf32> to vector<16x8xf32>
    %13 = vector.broadcast %11 : vector<1x8xf32> to vector<16x8xf32>
    %14 = arith.mulf %12, %13 : vector<16x8xf32>
    %15 = arith.addf %9, %14 : vector<16x8xf32>
    %cst = arith.constant 0.000000e+00 : f32
    %16 = vector.broadcast %cst : f32 to vector<16x8xf32>
    %17 = arith.cmpf oge, %15, %16 : vector<16x8xf32>
    %cst_5 = arith.constant 0.00999999977 : f32
    %18 = vector.broadcast %cst_5 : f32 to vector<16x8xf32>
    %19 = arith.mulf %18, %15 : vector<16x8xf32>
    %20 = arith.select %17, %15, %19 : vector<16x8xi1>, vector<16x8xf32>
    %c0_6 = arith.constant 0 : index
    %c0_7 = arith.constant 0 : index
    %21 = vector.load %arg3[%c0_6, %c0_7] : memref<16x8xf32, #tpu.memory_space<vmem>>, vector<16x8xf32>
    tpu.vector_store %arg3[%c0_6, %c0_7], %20 {strides = array<i32>} : memref<16x8xf32, #tpu.memory_space<vmem>>, vector<16x8xf32>,
    return
  }
}

</mosaic_0001>

<bundles_post_ra>
// kernel: tpu_custom_call.1
= control target key start
LH: loop header
LB: loop body
LE: loop exit
PB: predicated region body
PF: predicated region fallthrough
CT: control target
= control target key end

     0   :  { %v77_v0 = vmov 1   ;;  %v78_v1 = vmov 0   ;;  %v28_v4 = vlaneseq  ;;  %vm64_vm0 = vcmask 64512   ;;  %s117_s0 = inlined_call_operand.vmem [shape: f32[16,2], index: 0, kind: input, shape index: {}]   ;;  %s118_s1 = inlined_call_operand.vmem [shape: f32[2,8], index: 1, kind: input, shape index: {}]   ;;  %s119_s2 = inlined_call_operand.vmem [shape: f32[1,8], index: 2, kind: input, shape index: {}]   ;;  %s120_s3 = inlined_call_operand.vmem [shape: f32[16,8], index: 3, kind: output, shape index: {}]  }
   0x1   :  { %75 = vset.pattern.permute.xlu1 %v77_v0  ;;  %74 = vset.pattern.permute.xlu0 %v78_v1  ;;  %v14_v2 = vld [vmem:[%s117_s0] sm:$0xff]  ;;  %v15_v3 = vld [vmem:[%s117_s0 + $0x8] sm:$0xff] }
   0x2   :  { %43 = vperm.xlu1 %75, %v14_v2   ;;  %20 = vperm.xlu0 %74, %v14_v2   ;;  %v29_v5 = vshrl.u32 %v28_v4, 7  ;;  %v16_v8 = vld [vmem:[%s118_s1] sm:$0x3] }
   0x3   :  { %v71_v12 = vld [vmem:[%s119_s2] ss:$0 sm:$0xff] }
   0x4   :  { %v52_v6 = vsub.s32 1, %v29_v5  ;;  %v30_v7 = vsub.s32 0, %v29_v5 }
   0x6   :  { %47 = vperm.xlu1 %75, %v15_v3   ;;  %25 = vperm.xlu0 %74, %v15_v3   ;;  %v53_v9 = vrot.slane %v16_v8, %v52_v6  ;;  %v31_v10 = vrot.slane %v16_v8, %v30_v7 }
   0xa   :  { %76 = vset.pattern.permute.xlu0 %v77_v0 }
  0x81   :  { %v44_v11 = vpop.permute.xlu1 %43  ;;  %v21_v13 = vpop.permute.xlu0 %20 }
  0x82   :  { %v54_v14 = vmul.f32 %v53_v9, %v44_v11  ;;  %v32_v15 = vmul.f32 %v31_v10, %v21_v13 }
  0x84   :  { %v40_v16 = vadd.f32 %v71_v12, %v32_v15 }
  0x85   :  { %v48_v17 = vpop.permute.xlu1 %47  ;;  %v26_v18 = vpop.permute.xlu0 %25 }
  0x86   :  { %v56_v19 = vadd.f32 %v54_v14, %v40_v16  ;;  %v33_v20 = vmul.f32 %v31_v10, %v26_v18  ;;  %v55_v22 = vmul.f32 %v53_v9, %v48_v17 }
  0x88   :  { %vm58_vm1 = vcmp.ge.f32.partialorder %v56_v19, 0.0  ;;  %v60_v21 = vmul.f32 0.01, %v56_v19  ;;  %v41_v23 = vadd.f32 %v71_v12, %v33_v20 }
  0x8a   :  { %v62_v24 = vsel %vm58_vm1, %v56_v19, %v60_v21  ;;  %v57_v25 = vadd.f32 %v55_v22, %v41_v23 }
  0x8b   :  { %65 = vst.msk [vmem:[%s120_s3] sm:$0xff] %vm64_vm0, %v62_v24 }
  0x8c   :  { %vm59_vm2 = vcmp.ge.f32.partialorder %v57_v25, 0.0  ;;  %v61_v26 = vmul.f32 0.01, %v57_v25 }
  0x8e   :  { %v63_v27 = vsel %vm59_vm2, %v57_v25, %v61_v26 }
  0x8f   :  { %66 = vst.msk [vmem:[%s120_s3 + $0x8] sm:$0xff] %vm64_vm0, %v63_v27 }

</bundles_post_ra>
